<compile_context>
chip_gen: v6e
topology: v6e:2x2x1
jax: 0.10.0
libtpu: 0.0.40
codegen_flags: <defaults>
</compile_context>

<pallas_src>
import functools

import jax
import jax.numpy as jnp
import numpy as np
from jax.experimental import pallas as pl
from jax.experimental.pallas import tpu as pltpu

BN_EPS = 1e-5


# ---------------------------------------------------------------------------
# Glue: exact PyTorch bilinear (align_corners=False) interpolation matrix.
# ---------------------------------------------------------------------------
def _bilinear_matrix(out_size: int, in_size: int) -> np.ndarray:
    scale = in_size / out_size
    L = np.zeros((out_size, in_size), dtype=np.float32)
    for i in range(out_size):
        src = (i + 0.5) * scale - 0.5
        src = max(src, 0.0)                      # PyTorch clamps the source coordinate
        i0 = min(int(np.floor(src)), in_size - 1)
        i1 = min(i0 + 1, in_size - 1)
        frac = src - i0
        L[i, i0] += 1.0 - frac
        L[i, i1] += frac
    return L


# ---------------------------------------------------------------------------
# Fused kernel: BatchNorm (training stats) + bilinear upsample (kron matmul)
# + CCP polynomial layer. Everything stays in VMEM/vregs; one lane-dense
# (B, s) write at the end.
# ---------------------------------------------------------------------------
def generator_kernel(x_ref, gamma_ref, beta_ref, upT_ref, a_ref, c_ref,
                     bias_ref, o_ref, *, n_degree, rank):
    x = x_ref[...]                                   # (B, h_in*w_in)
    # BatchNorm2d(1), training mode: stats over the full (N, H, W) volume, biased var.
    mean = jnp.mean(x)
    var = jnp.mean((x - mean) ** 2)
    xn = (x - mean) * jax.lax.rsqrt(var + BN_EPS)
    xn = xn * gamma_ref[0, 0] + beta_ref[0, 0]

    # Bilinear upsample, flattened: v[b, :] = kron(Lh, Lw) @ xn_flat[b, :]
    v = jnp.dot(xn, upT_ref[...], preferred_element_type=jnp.float32)     # (B, s)

    # CCP polynomial layer: one concatenated projection, recurrence on the VPU.
    proj = jnp.dot(v, a_ref[...], preferred_element_type=jnp.float32)     # (B, N*rank)
    h = proj[:, 0:rank]
    for n in range(1, n_degree):                     # h_n = (v A_n) * h_{n-1} + h_{n-1}
        h = proj[:, n * rank:(n + 1) * rank] * h + h
    o_ref[...] = (
        jnp.dot(h, c_ref[...], preferred_element_type=jnp.float32) + bias_ref[...]
    )


# ---------------------------------------------------------------------------
# Wrapper
# ---------------------------------------------------------------------------
def generator_forward(x, params):
    B, C, h_in, w_in = x.shape
    assert C == 1
    H, W = params["imwidth"], params["imheight"]     # PyTorch module: H axis <-> imwidth
    s = H * W
    N, _, rank = params["A"].shape

    vmem = functools.partial(pl.BlockSpec, memory_space=pltpu.MemorySpace.VMEM)
    smem = functools.partial(pl.BlockSpec, memory_space=pltpu.MemorySpace.SMEM)

    x_flat = x.reshape(B, h_in * w_in)               # free XLA reshape (HBM metadata)

    out = pl.pallas_call(
        functools.partial(generator_kernel, n_degree=N, rank=rank),
        out_shape=jax.ShapeDtypeStruct((B, s), jnp.float32),
        in_specs=[vmem(), smem(), smem(), vmem(), vmem(), vmem(), vmem()],
        out_specs=vmem(),
    )(x_flat, params["bn_gamma"], params["bn_beta"],
      params["UpT"], params["A_cat"], params["C"], params["b"])

    return out.reshape(B, 1, H, W)


# ---------------------------------------------------------------------------
# Pure-JAX reference (for correctness check)
# ---------------------------------------------------------------------------
def generator_reference(x, params):
    B = x.shape[0]
    mean = jnp.mean(x)
    var = jnp.mean((x - mean) ** 2)
    xn = (x - mean) / jnp.sqrt(var + BN_EPS)
    xn = xn * params["bn_gamma"][0, 0] + params["bn_beta"][0, 0]
    up = jnp.einsum("Hh,bchw,wW->bcHW", params["Lh"], xn, params["LwT"])
    v = up.reshape(B, -1)
    A = params["A"]
    h = v @ A[0]
    for n in range(1, A.shape[0]):
        h = (v @ A[n]) * h + h
    out = h @ params["C"] + params["b"]
    return out.reshape(B, 1, params["imwidth"], params["imheight"])


# ---------------------------------------------------------------------------
# Parameter construction
# ---------------------------------------------------------------------------
def build_params(key, imwidth, imheight, scalefactor, N, rank):
    s = imwidth * imheight
    h_in, w_in = imwidth // scalefactor, imheight // scalefactor

    ka, kc, kb = jax.random.split(key, 3)

    Lh = _bilinear_matrix(imwidth, h_in)             # (H_out, h_in) acts on tensor H axis
    Lw = _bilinear_matrix(imheight, w_in)            # (W_out, w_in) acts on tensor W axis
    UpT = np.kron(Lh, Lw).T                          # (h_in*w_in, s): flat upsample matrix

    A = 0.1 * jax.random.normal(ka, (N, s, rank), dtype=jnp.float32)
    A_cat = jnp.transpose(A, (1, 0, 2)).reshape(s, N * rank)   # degree-n chunk = cols n*rank:(n+1)*rank

    return {
        "imwidth": imwidth,
        "imheight": imheight,
        # BatchNorm2d(1) defaults: weight=1, bias=0
        "bn_gamma": jnp.ones((1, 1), dtype=jnp.float32),
        "bn_beta": jnp.zeros((1, 1), dtype=jnp.float32),
        # bilinear upsample matrices (exact PyTorch align_corners=False rule)
        "Lh": jnp.asarray(Lh),
        "LwT": jnp.asarray(Lw.T),
        "UpT": jnp.asarray(UpT),
        # CCP polynomial layer weights
        "A": A,
        "A_cat": A_cat,
        "C": 0.1 * jax.random.normal(kc, (rank, s), dtype=jnp.float32),
        "b": 0.01 * jax.random.normal(kb, (1, s), dtype=jnp.float32),
    }


if __name__ == "__main__":
    B, N, rank, scalefactor = 2, 3, 8, 2
    key = jax.random.PRNGKey(0)

    # Two configs: square (original test) and non-square (exercises the H<->imwidth,
    # W<->imheight orientation flagged in the review).
    for imwidth, imheight in [(16, 16), (16, 32)]:
        kp, kx, key = jax.random.split(key, 3)
        h_in, w_in = imwidth // scalefactor, imheight // scalefactor

        params = build_params(kp, imwidth, imheight, scalefactor, N, rank)
        x = jax.random.normal(kx, (B, 1, h_in, w_in), dtype=jnp.float32)

        out = generator_forward(x, params)
        out = jax.block_until_ready(out)

        ref = generator_reference(x, params)
        assert out.shape == (B, 1, imwidth, imheight)
        np.testing.assert_allclose(np.asarray(out), np.asarray(ref),
                                   rtol=1e-4, atol=1e-4)

    print("KERNEL_OK")
</pallas_src>

<mosaic_0001>
module attributes {stable_mosaic.version = 11 : i64} {
  func.func @generator_kernel(%arg0: memref<2x64xf32, #tpu.memory_space<vmem>>, %arg1: memref<1x1xf32, #tpu.memory_space<smem>>, %arg2: memref<1x1xf32, #tpu.memory_space<smem>>, %arg3: memref<64x256xf32, #tpu.memory_space<vmem>>, %arg4: memref<256x24xf32, #tpu.memory_space<vmem>>, %arg5: memref<8x256xf32, #tpu.memory_space<vmem>>, %arg6: memref<1x256xf32, #tpu.memory_space<vmem>>, %arg7: memref<2x256xf32, #tpu.memory_space<vmem>>) attributes {dimension_semantics = [], scalar_prefetch = 0 : i64, scratch_operands = 0 : i64, tpu.core_type = #tpu.core_type<tc>} {
    %c0 = arith.constant 0 : index
    %c0_0 = arith.constant 0 : index
    %0 = vector.load %arg0[%c0, %c0_0] : memref<2x64xf32, #tpu.memory_space<vmem>>, vector<2x64xf32>
    %1 = vector.shape_cast %0 : vector<2x64xf32> to vector<1x2x64xf32>
    %cst = arith.constant dense<0.000000e+00> : vector<1xf32>
    %2 = vector.multi_reduction <add>, %1, %cst [1, 2] : vector<1x2x64xf32> to vector<1xf32>
    %3 = vector.shape_cast %2 : vector<1xf32> to vector<1x1x1xf32>
    %4 = vector.extract %3[0, 0, 0] : f32 from vector<1x1x1xf32>
    %cst_1 = arith.constant 1.280000e+02 : f32
    %5 = arith.divf %4, %cst_1 : f32
    %6 = vector.broadcast %5 : f32 to vector<2x64xf32>
    %7 = arith.subf %0, %6 : vector<2x64xf32>
    %8 = arith.mulf %7, %7 : vector<2x64xf32>
    %9 = vector.shape_cast %8 : vector<2x64xf32> to vector<1x2x64xf32>
    %cst_2 = arith.constant dense<0.000000e+00> : vector<1xf32>
    %10 = vector.multi_reduction <add>, %9, %cst_2 [1, 2] : vector<1x2x64xf32> to vector<1xf32>
    %11 = vector.shape_cast %10 : vector<1xf32> to vector<1x1x1xf32>
    %12 = vector.extract %11[0, 0, 0] : f32 from vector<1x1x1xf32>
    %cst_3 = arith.constant 1.280000e+02 : f32
    %13 = arith.divf %12, %cst_3 : f32
    %14 = vector.broadcast %5 : f32 to vector<2x64xf32>
    %15 = arith.subf %0, %14 : vector<2x64xf32>
    %cst_4 = arith.constant 9.99999974E-6 : f32
    %16 = arith.addf %13, %cst_4 : f32
    %17 = math.rsqrt %16 : f32
    %18 = vector.broadcast %17 : f32 to vector<2x64xf32>
    %19 = arith.mulf %15, %18 : vector<2x64xf32>
    %c0_5 = arith.constant 0 : index
    %c0_6 = arith.constant 0 : index
    %20 = memref.load %arg1[%c0_5, %c0_6] : memref<1x1xf32, #tpu.memory_space<smem>>
    %21 = vector.broadcast %20 : f32 to vector<2x64xf32>
    %22 = arith.mulf %19, %21 : vector<2x64xf32>
    %c0_7 = arith.constant 0 : index
    %c0_8 = arith.constant 0 : index
    %23 = memref.load %arg2[%c0_7, %c0_8] : memref<1x1xf32, #tpu.memory_space<smem>>
    %24 = vector.broadcast %23 : f32 to vector<2x64xf32>
    %25 = arith.addf %22, %24 : vector<2x64xf32>
    %c0_9 = arith.constant 0 : index
    %c0_10 = arith.constant 0 : index
    %26 = vector.load %arg3[%c0_9, %c0_10] : memref<64x256xf32, #tpu.memory_space<vmem>>, vector<64x256xf32>
    %cst_11 = arith.constant dense<0.000000e+00> : vector<2x256xf32>
    %27 = tpu.matmul %25, %26, %cst_11 {dimension_numbers = #tpu.dot_dimension_numbers<[1], [0], [0], [1], [0, 0, 1, 1], [], []>} : vector<2x64xf32>, vector<64x256xf32>, vector<2x256xf32> -> vector<2x256xf32>
    %c0_12 = arith.constant 0 : index
    %c0_13 = arith.constant 0 : index
    %28 = vector.load %arg4[%c0_12, %c0_13] : memref<256x24xf32, #tpu.memory_space<vmem>>, vector<256x24xf32>
    %cst_14 = arith.constant dense<0.000000e+00> : vector<2x24xf32>
    %29 = tpu.matmul %27, %28, %cst_14 {dimension_numbers = #tpu.dot_dimension_numbers<[1], [0], [0], [1], [0, 0, 1, 1], [], []>} : vector<2x256xf32>, vector<256x24xf32>, vector<2x24xf32> -> vector<2x24xf32>
    %30 = vector.extract_strided_slice %29 {offsets = [0, 0], sizes = [2, 8], strides = [1, 1]} : vector<2x24xf32> to vector<2x8xf32>
    %31 = vector.extract_strided_slice %29 {offsets = [0, 8], sizes = [2, 8], strides = [1, 1]} : vector<2x24xf32> to vector<2x8xf32>
    %32 = arith.mulf %31, %30 : vector<2x8xf32>
    %33 = arith.addf %32, %30 : vector<2x8xf32>
    %34 = vector.extract_strided_slice %29 {offsets = [0, 16], sizes = [2, 8], strides = [1, 1]} : vector<2x24xf32> to vector<2x8xf32>
    %35 = arith.mulf %34, %33 : vector<2x8xf32>
    %36 = arith.addf %35, %33 : vector<2x8xf32>
    %c0_15 = arith.constant 0 : index
    %c0_16 = arith.constant 0 : index
    %37 = vector.load %arg5[%c0_15, %c0_16] : memref<8x256xf32, #tpu.memory_space<vmem>>, vector<8x256xf32>
    %cst_17 = arith.constant dense<0.000000e+00> : vector<2x256xf32>
    %38 = tpu.matmul %36, %37, %cst_17 {dimension_numbers = #tpu.dot_dimension_numbers<[1], [0], [0], [1], [0, 0, 1, 1], [], []>} : vector<2x8xf32>, vector<8x256xf32>, vector<2x256xf32> -> vector<2x256xf32>
    %c0_18 = arith.constant 0 : index
    %c0_19 = arith.constant 0 : index
    %39 = vector.load %arg6[%c0_18, %c0_19] : memref<1x256xf32, #tpu.memory_space<vmem>>, vector<1x256xf32>
    %40 = vector.broadcast %39 : vector<1x256xf32> to vector<2x256xf32>
    %41 = arith.addf %38, %40 : vector<2x256xf32>
    %c0_20 = arith.constant 0 : index
    %c0_21 = arith.constant 0 : index
    %42 = vector.load %arg7[%c0_20, %c0_21] : memref<2x256xf32, #tpu.memory_space<vmem>>, vector<2x256xf32>
    tpu.vector_store %arg7[%c0_20, %c0_21], %41 {strides = array<i32>} : memref<2x256xf32, #tpu.memory_space<vmem>>, vector<2x256xf32>,
    return
  }
}

</mosaic_0001>

<bundles_post_ra>
// kernel: tpu_custom_call.1
= control target key start
LH: loop header
LB: loop body
LE: loop exit
PB: predicated region body
PF: predicated region fallthrough
CT: control target
= control target key end

     0   :  { %vm30_vm0 = vcmask 517120   ;;  %s684_s0 = inlined_call_operand.vmem [shape: f32[2,64], index: 0, kind: input, shape index: {}]   ;;  %s685_s1 = inlined_call_operand.<no memory space> [shape: f32[1,1], index: 1, kind: input, shape index: {}]   ;;  %s686_s2 = inlined_call_operand.<no memory space> [shape: f32[1,1], index: 2, kind: input, shape index: {}]   ;;  %s687_s3 = inlined_call_operand.vmem [shape: f32[64,256], index: 3, kind: input, shape index: {}]   ;;  %s688_s4 = inlined_call_operand.vmem [shape: f32[256,24], index: 4, kind: input, shape index: {}]   ;;  %s689_s5 = inlined_call_operand.vmem [shape: f32[8,256], index: 5, kind: input, shape index: {}]   ;;  %s690_s6 = inlined_call_operand.vmem [shape: f32[1,256], index: 6, kind: input, shape index: {}]   ;;  %s691_s7 = inlined_call_operand.hbm [shape: f32[2,256], index: 7, kind: output, shape index: {}]  }
   0x1   :  { %v29_v0 = vld [vmem:[%s684_s0] sm:$0x3] }
   0x2   :  { %14 = vsyncpa [#allocation5], 0  ;;  %v31_v1 = vsel %vm30_vm0, %v29_v0, 0.0  ;;  %v87_v13 = vld [vmem:[%s687_s3 + $0x78] sm:$0xff]  ;;  %v86_v14 = vld [vmem:[%s687_s3 + $0x70] sm:$0xff]  ;;  %v466_v35 = vmov 0.0  }
   0x3   :  { %32 = vadd.xlane.f32.xlu0 %v31_v1  ;;  %v85_v15 = vld [vmem:[%s687_s3 + $0x68] sm:$0xff]  ;;  %108 = vmatprep.subr.mxu0 %v87_v13  ;;  %v84_v16 = vld [vmem:[%s687_s3 + $0x60] sm:$0xff]  ;;  %v83_v17 = vld [vmem:[%s687_s3 + $0x58] sm:$0xff]  ;;  %vm88_vm1 = vcmask 523264   ;;  %s467_s30 = smov 8   ;;  %vm294_vm2 = vcmask 64512  }
   0x4   :  { %109 = vmatpush1.msra.mxu0 %v86_v14  ;;  %v82_v18 = vld [vmem:[%s687_s3 + $0x50] sm:$0xff]  ;;  %v81_v19 = vld [vmem:[%s687_s3 + $0x48] sm:$0xff]  ;;  %v80_v20 = vld [vmem:[%s687_s3 + $0x40] sm:$0xff]  ;;  %156 = vmatprep.mubr.f32.mxu0 %v466_v35  ;;  %s469_s13 = smov [#allocation4]  }
   0x5   :  { %110 = vmatprep.subr.mxu0 %v85_v15  ;;  %v79_v23 = vld [vmem:[%s687_s3 + $0x38] sm:$0xff]  ;;  %v78_v25 = vld [vmem:[%s687_s3 + $0x30] sm:$0xff]  ;;  %v77_v26 = vld [vmem:[%s687_s3 + $0x28] sm:$0xff]  ;;  %s386_s14 = sshll.u32 %s469_s13, 4  ;;  %s387_s14 = int_to_ptr.vmem [resolvable:$true] %s386_s14 }
   0x6   :  { %111 = vmatpush1.msra.mxu0 %v84_v16  ;;  %v76_v28 = vld [vmem:[%s687_s3 + $0x20] sm:$0xff]  ;;  %v75_v29 = vld [vmem:[%s687_s3 + $0x18] sm:$0xff]  ;;  %v74_v31 = vld [vmem:[%s687_s3 + $0x10] sm:$0xff]  ;;  %s444_s15 = scalar_lea.vmem %s387_s14, 64  ;;  %p449_p1 = scmp.lt.s32.totalorder %s387_s14, %s387_s14 }
   0x7   :  { %112 = vmatprep.subr.mxu0 %v83_v17  ;;  %v73_v32 = vld [vmem:[%s687_s3 + $0x8] sm:$0xff]  ;;  %v72_v34 = vld [vmem:[%s687_s3] sm:$0xff]  ;;  %v194_v37 = vld [vmem:[%s688_s4 + $0xf8] sm:$0xff]  ;;  %p445_p0 = scmp.ne.s32.totalorder %s387_s14, %s444_s15  ;;  %p450_p2 = scmp.lt.s32.totalorder %s444_s15, %s444_s15 }
   0x8   :  { %113 = vmatpush1.msra.mxu0 %v82_v18  ;;  %v178_v38 = vld [vmem:[%s688_s4 + $0x78] sm:$0xff]  ;;  %v193_v39 = vld [vmem:[%s688_s4 + $0xf0] sm:$0xff]  ;;  %397 = vmatprep.subr.mxu1 %v194_v37  ;;  %v192_v41 = vld [vmem:[%s688_s4 + $0xe8] sm:$0xff] }
   0x9   :  { %114 = vmatprep.subr.mxu0 %v81_v19  ;;  %v177_v40 = vld [vmem:[%s688_s4 + $0x70] sm:$0xff]  ;;  %398 = vmatpush3.msra.mxu1 %v178_v38  ;;  %v176_v42 = vld [vmem:[%s688_s4 + $0x68] sm:$0xff]  ;;  %v191_v43 = vld [vmem:[%s688_s4 + $0xe0] sm:$0xff]  ;;  %p451_p3 = por %p450_p2, %p449_p1 }
   0xa   :  { %115 = vmatpush1.msra.mxu0 %v80_v20  ;;  %399 = vmatprep.subr.mxu1 %v193_v39  ;;  %v175_v44 = vld [vmem:[%s688_s4 + $0x60] sm:$0xff]  ;;  %v190_v45 = vld [vmem:[%s688_s4 + $0xd8] sm:$0xff]  ;;  %v189_v47 = vld [vmem:[%s688_s4 + $0xd0] sm:$0xff] }
   0xb   :  { %116 = vmatprep.subr.mxu0 %v79_v23  ;;  %400 = vmatpush3.msra.mxu1 %v177_v40  ;;  %v174_v46 = vld [vmem:[%s688_s4 + $0x58] sm:$0xff]  ;;  %v173_v48 = vld [vmem:[%s688_s4 + $0x50] sm:$0xff]  ;;  %v188_v49 = vld [vmem:[%s688_s4 + $0xc8] sm:$0xff]  ;;  %p452_p4 = pnand %p451_p3, %p445_p0 }
   0xc   :  { %117 = vmatpush1.msra.mxu0 %v78_v25  ;;  %401 = vmatprep.subr.mxu1 %v192_v41  ;;  %v172_v50 = vld [vmem:[%s688_s4 + $0x48] sm:$0xff]  ;;  %v187_v51 = vld [vmem:[%s688_s4 + $0xc0] sm:$0xff]  ;;  %v186_v53 = vld [vmem:[%s688_s4 + $0xb8] sm:$0xff] }
   0xd   :  { %118 = vmatprep.subr.mxu0 %v77_v26  ;;  %402 = vmatpush3.msra.mxu1 %v176_v42  ;;  %v171_v52 = vld [vmem:[%s688_s4 + $0x40] sm:$0xff]  ;;  %v170_v54 = vld [vmem:[%s688_s4 + $0x38] sm:$0xff]  ;;  %v185_v55 = vld [vmem:[%s688_s4 + $0xb0] sm:$0xff] }
   0xe   :  { %119 = vmatpush1.msra.mxu0 %v76_v28  ;;  %403 = vmatprep.subr.mxu1 %v191_v43  ;;  %v169_v56 = vld [vmem:[%s688_s4 + $0x30] sm:$0xff]  ;;  %v184_v57 = vld [vmem:[%s688_s4 + $0xa8] sm:$0xff]  ;;  %v183_v59 = vld [vmem:[%s688_s4 + $0xa0] sm:$0xff] }
   0xf   :  { %120 = vmatprep.subr.mxu0 %v75_v29  ;;  %404 = vmatpush3.msra.mxu1 %v175_v44  ;;  %v168_v58 = vld [vmem:[%s688_s4 + $0x28] sm:$0xff]  ;;  %v167_v60 = vld [vmem:[%s688_s4 + $0x20] sm:$0xff]  ;;  %v182_v61 = vld [vmem:[%s688_s4 + $0x98] sm:$0xff] }
  0x10   :  { %121 = vmatpush1.msra.mxu0 %v74_v31  ;;  %405 = vmatprep.subr.mxu1 %v190_v45  ;;  %v166_v62 = vld [vmem:[%s688_s4 + $0x18] sm:$0xff]  ;;  %v181_v63 = vld [vmem:[%s688_s4 + $0x90] sm:$0xff]  ;;  %v278_v18 = vld [vmem:[%s689_s5 + $0x8] sm:$0xff] }
  0x11   :  { %122 = vmatprep.subr.mxu0 %v73_v32  ;;  %406 = vmatpush3.msra.mxu1 %v174_v46  ;;  %v277_v19 = vld [vmem:[%s689_s5] sm:$0xff] }
  0x12   :  { %123 = vmatpush1.msra.mxu0 %v72_v34  ;;  %407 = vmatprep.subr.mxu1 %v189_v47  ;;  %v279_v31 = vld [vmem:[%s690_s6] sm:$0x3] }
  0x13   :  { %408 = vmatpush3.msra.mxu1 %v173_v48  ;;  %327 = vmatprep.subr.mxu0 %v278_v18 }
  0x14   :  { %409 = vmatprep.subr.mxu1 %v188_v49 }
  0x15   :  { %410 = vmatpush3.msra.mxu1 %v172_v50 }
  0x16   :  { %411 = vmatprep.subr.mxu1 %v187_v51 }
  0x17   :  { %412 = vmatpush3.msra.mxu1 %v171_v52 }
  0x18   :  { %413 = vmatprep.subr.mxu1 %v186_v53 }
  0x19   :  { %414 = vmatpush3.msra.mxu1 %v170_v54 }
  0x1a   :  { %415 = vmatprep.subr.mxu1 %v185_v55 }
  0x1b   :  { %416 = vmatpush3.msra.mxu1 %v169_v56 }
  0x1c   :  { %417 = vmatprep.subr.mxu1 %v184_v57 }
  0x1d   :  { %418 = vmatpush3.msra.mxu1 %v168_v58 }
  0x1e   :  { %419 = vmatprep.subr.mxu1 %v183_v59 }
  0x1f   :  { %420 = vmatpush3.msra.mxu1 %v167_v60 }
  0x20   :  { %421 = vmatprep.subr.mxu1 %v182_v61 }
  0x21   :  { %422 = vmatpush3.msra.mxu1 %v166_v62 }
  0x22   :  { %423 = vmatprep.subr.mxu1 %v181_v63 }
  0x8c   :  { %v33_v2 = vpop.xlane.xlu0 %32 }
  0x8d   :  { %v34_v3 = vrot.slane %v33_v2, 4 }
  0x8f   :  { %v35_v4 = vadd.f32 %v34_v3, %v33_v2 }
  0x91   :  { %v36_v5 = vrot.slane %v35_v4, 2 }
  0x93   :  { %v37_v6 = vadd.f32 %v36_v5, %v35_v4  ;;  %v67_v4 = vstv %s685_s1 }
  0x95   :  { %v38_v7 = vrot.slane %v37_v6, 1 }
  0x97   :  { %v39_v8 = vadd.f32 %v38_v7, %v37_v6  ;;  %v70_v6 = vstv %s686_s2 }
  0x99   :  { %432 = vpush %v39_v8 }
  0xca   :  { %s433_s26 = spop %432 }
  0xcb   :  { %s43_s27 = smul.f32 0.0078125, %s433_s26 }
  0xcd   :  { %v44_v9 = vstv %s43_s27 }
  0xce   :  { %v514_v10 = vsub.f32 %v29_v0, %v44_v9  ;;  %v165_v0 = vld [vmem:[%s688_s4 + $0x10] sm:$0xff]  ;;  %v180_v9 = vld [vmem:[%s688_s4 + $0x88] sm:$0xff] }
  0xcf   :  { %424 = vmatpush3.msra.mxu1 %v165_v0 }
  0xd0   :  { %v46_v11 = vmul.f32 %v514_v10, %v514_v10  ;;  %425 = vmatprep.subr.mxu1 %v180_v9 }
  0xd2   :  { %v47_v12 = vsel %vm30_vm0, %v46_v11, 0.0  ;;  %v164_v11 = vld [vmem:[%s688_s4 + $0x8] sm:$0xff] }
  0xd3   :  { %48 = vadd.xlane.f32.xlu0 %v47_v12  ;;  %426 = vmatpush3.msra.mxu1 %v164_v11  ;;  %v163_v12 = vld [vmem:[%s688_s4] sm:$0xff] }
 0x15c   :  { %v49_v21 = vpop.xlane.xlu0 %48 }
 0x15d   :  { %v50_v22 = vrot.slane %v49_v21, 4 }
 0x15f   :  { %v51_v24 = vadd.f32 %v50_v22, %v49_v21 }
 0x161   :  { %v52_v27 = vrot.slane %v51_v24, 2 }
 0x163   :  { %v53_v30 = vadd.f32 %v52_v27, %v51_v24  ;;  %v281_v27 = vlaneseq }
 0x165   :  { %v54_v33 = vrot.slane %v53_v30, 1  ;;  %v282_v28 = vshrl.u32 %v281_v27, 7 }
 0x167   :  { %v55_v36 = vadd.f32 %v54_v33, %v53_v30  ;;  %v283_v29 = vsub.s32 0, %v282_v28  ;;  %v287_v30 = vsub.s32 1, %v282_v28 }
 0x169   :  { %434 = vpush %v55_v36  ;;  %v284_v32 = vrot.slane %v279_v31, %v283_v29  ;;  %v288_v33 = vrot.slane %v279_v31, %v287_v30 }
 0x19a   :  { %s435_s18 = spop %434 }
 0x19b   :  { %s59_s3 = smul.f32 0.0078125, %s435_s18 }
 0x19d   :  { %s60_s19 = sadd.f32 1e-05, %s59_s3 }
 0x19f   :  { %v61_v1 = vstv %s60_s19 }
 0x1a0   :  { %442 = vrsqrt.f32 %v61_v1 }
 0x1ad   :  { %v443_v2 = vpop.eup %442 }
 0x1ae   :  { %436 = vpush %v443_v2 }
 0x1df   :  { %s437_s20 = spop %436 }
 0x1e0   :  { %v64_v3 = vstv %s437_s20 }
 0x1e1   :  { %v65_v5 = vmul.f32 %v64_v3, %v514_v10  ;;  %v179_v10 = vld [vmem:[%s688_s4 + $0x80] sm:$0xff]  ;;  %s468_s4 = smov 112  }
 0x1e2   :  { %427 = vmatprep.subr.mxu1 %v179_v10 }
 0x1e3   :  { %v68_v7 = vmul.f32 %v67_v4, %v65_v5  ;;  %428 = vmatpush3.msra.mxu1 %v163_v12 }
 0x1e5   :  { %v71_v8 = vadd.f32 %v70_v6, %v68_v7 }
 0x1e7   :  { %394 = vmatmul.mubr.msk.f32.vlgmr.msra.gmra.mxu0 %vm88_vm1, %v71_v8 }
 0x1e8   :  { %361 = vmatprep.mubr.f32.mxu0 %v466_v35  ;;  %328 = vmatpush1.msra.mxu0 %v277_v19 }
 0x2a7   :  { %v158_v13 = vpop.f32.mrf.mxu0 }
 0x2a9   :  { %v160_v14 = vpop.f32.mrf.mxu0 }
 0x2aa   :  { %259 = vmatprep.mubr.f32.mxu1 %v160_v14 }
 0x2ab   :  { %260 = vmatmul.mubr.f32.vlgmr.msra.gmra.mxu1 %v158_v13 }
 0x36b   :  { %v429_v15 = vpop.f32.mrf.mxu1 }
 0x36d   :  { %v430_v16 = vpop.f32.mrf.mxu1 }
 0x36e   :  { %v431_v17 = vadd.f32 %v430_v16, %v429_v15 }
 0x370   :  { %266 = vrot.lane.b32.xlu1 %v431_v17, %s467_s30 }
 0x3e2   :  { %v267_v20 = vpop.permute.xlu1 %266 }
 0x3e3   :  { %v269_v21 = vmul.f32 %v431_v17, %v267_v20 }
 0x3e5   :  { %v270_v22 = vadd.f32 %v269_v21, %v267_v20 }
 0x3e7   :  { %272 = vrot.lane.b32.xlu1 %v270_v22, %s467_s30 }
 0x459   :  { %v273_v23 = vpop.permute.xlu1 %272 }
 0x45a   :  { %v275_v24 = vmul.f32 %v431_v17, %v273_v23 }
 0x45c   :  { %v276_v25 = vadd.f32 %v275_v24, %v273_v23 }
 0x45e   :  { %292 = vrot.lane.b32.xlu0 %v276_v25, %s468_s4 }
 0x4d0   :  { %v293_v26 = vpop.permute.xlu0 %292 }
 0x4d1   :  { %395 = vmatmul.mubr.msk.f32.vlgmr.msra.gmra.mxu0 %vm294_vm2, %v293_v26 }
 0x591   :  { %v363_v34 = vpop.f32.mrf.mxu0 }
 0x592   :  { %v364_v36 = vadd.f32 %v363_v34, %v284_v32 }
 0x593   :  { %v365_v35 = vpop.f32.mrf.mxu0 }
 0x594   :  { %v366_v37 = vadd.f32 %v365_v35, %v288_v33 }
 0x596   :  { %v370_v38 = vcombine.low %v364_v36, %v366_v37 }
 0x598   :  { %396 = vst.sshfl [vmem:[#allocation4] sm:$0x33 pattern:$0x76325410] %v370_v38 }
 0x599   :  { %455 = shalt.err (!%p452_p4)
}
 0x59a   :  { %389 = dma.vmem_to_hbm [thread:$0]  %s387_s14, 64, %s691_s7, [#allocation5]  }
 0x59b   :  { %464 = dma.done.wait [#allocation5], 64  }
 0x59c   :  { %465 = vsyncadd [#allocation5], 4294967232 }
 0x59d   :  { %393 = vsyncpa [#allocation5], 1 }

</bundles_post_ra>
